<compile_context>
chip_gen: v5e
topology: v5e:2x2
jax: 0.10.0
libtpu: 0.0.40
codegen_flags: <defaults>
</compile_context>

<pallas_src>
import jax
import jax.numpy as jnp
from jax.experimental import pallas as pl
from jax.experimental.pallas import tpu as pltpu

LANE = 128


def _round_up(x, m):
    return ((x + m - 1) // m) * m


# ----------------------------------------------------------------------------
# Fused kernel (built per layer-count via closure)
# ----------------------------------------------------------------------------
def _make_encoder_kernel(n_hidden, n_pad):
    """kernel(x_ref, w0, b0, ..., w_head, b_head, mu_ref, logvar_ref, std_ref)."""

    def kernel(*refs):
        x_ref = refs[0]
        mu_ref, logvar_ref, std_ref = refs[-3:]
        p = refs[1:-3]

        f = x_ref[...].astype(jnp.float32)
        # Compress stack: feature = relu(f @ W + b), fully in vregs/VMEM.
        # Matmul operands bf16, f32 accumulation; bias/ReLU in f32 (v5e-safe).
        for l in range(n_hidden):
            w = p[2 * l][...]                       # bf16 [Din(_pad), Dout_pad]
            b = p[2 * l + 1][...]                   # f32  [1, Dout_pad]
            y = jnp.dot(f.astype(jnp.bfloat16), w,
                        preferred_element_type=jnp.float32)
            f = jnp.maximum(y + b, 0.0)

        # Merged head: one [D_pad, 2*Npad] matmul producing (mu | logvar).
        wh = p[2 * n_hidden][...]                   # bf16 [D_pad, 2*Npad]
        bh = p[2 * n_hidden + 1][...]               # f32  [1, 2*Npad]
        h = jnp.dot(f.astype(jnp.bfloat16), wh,
                    preferred_element_type=jnp.float32) + bh

        mu = h[:, :n_pad]                           # lane-aligned slices (n_pad % 128 == 0)
        logvar = h[:, n_pad:]
        std = jnp.exp(0.5 * logvar)                 # EUP, overlaps MXU work

        # Direct lane-dense stores; no concat / packed temporary.
        mu_ref[...] = mu.astype(mu_ref.dtype)
        logvar_ref[...] = logvar.astype(logvar_ref.dtype)
        std_ref[...] = std.astype(std_ref.dtype)

    return kernel


# ----------------------------------------------------------------------------
# One-time parameter preparation: pad widths to 128 lanes, merge fc1||fc2,
# cast weights to bf16 (biases stay f32).  Hoisted out of the forward pass.
# ----------------------------------------------------------------------------
def prepare_encoder(params, noise_dim, *, weight_dtype=jnp.bfloat16):
    flat = []
    prev_pad = None
    for (w, b) in params["seq"]:
        d_in, d_out = w.shape
        d_in_p = d_in if prev_pad is None else prev_pad
        d_out_p = _round_up(d_out, LANE)
        wp = jnp.zeros((d_in_p, d_out_p), jnp.float32).at[:d_in, :d_out].set(w)
        bp = jnp.zeros((1, d_out_p), jnp.float32).at[:, :d_out].set(b)
        flat += [wp.astype(weight_dtype), bp]
        prev_pad = d_out_p

    w1, b1 = params["fc1"]
    w2, b2 = params["fc2"]
    d_in, n = w1.shape
    assert n == noise_dim
    d_in_p = d_in if prev_pad is None else prev_pad
    n_pad = _round_up(noise_dim, LANE)
    wh = jnp.zeros((d_in_p, 2 * n_pad), jnp.float32)
    wh = wh.at[:d_in, :n].set(w1).at[:d_in, n_pad:n_pad + n].set(w2)
    bh = jnp.zeros((1, 2 * n_pad), jnp.float32)
    bh = bh.at[:, :n].set(b1).at[:, n_pad:n_pad + n].set(b2)
    flat += [wh.astype(weight_dtype), bh]

    return {
        "flat_params": tuple(flat),
        "n_hidden": len(params["seq"]),
        "noise_dim": noise_dim,
        "n_pad": n_pad,
    }


# ----------------------------------------------------------------------------
# Forward: single fused pallas_call, batch tiled over a parallel grid
# ----------------------------------------------------------------------------
def encoder_forward(enc, x, *, row_tile=4096):
    B, data_dim = x.shape
    n_hidden = enc["n_hidden"]
    n_pad = enc["n_pad"]
    noise_dim = enc["noise_dim"]
    flat_params = enc["flat_params"]

    # Big batch tile (multiple of 8 sublanes) amortizes per-step pipeline
    # overhead; for large B that fits in one tile, force >=2 grid steps so both
    # v7x TensorCores get work (one harmless extra step on 1-TC v5e/v6e).
    tile = min(_round_up(B, 8), row_tile)
    if B >= 128 and pl.cdiv(B, tile) < 2:
        tile = _round_up(pl.cdiv(B, 2), 8)
    grid = (pl.cdiv(B, tile),)

    in_specs = [pl.BlockSpec((tile, data_dim), lambda i: (i, 0))]
    for prm in flat_params:
        # Constant index_map: weights stay VMEM-resident across batch tiles.
        in_specs.append(pl.BlockSpec(prm.shape, lambda i: (0, 0)))
    out_specs = (pl.BlockSpec((tile, n_pad), lambda i: (i, 0)),) * 3
    out_shape = tuple(jax.ShapeDtypeStruct((B, n_pad), x.dtype) for _ in range(3))

    # VMEM budget: double-buffered x/out tiles + params + slack.
    param_bytes = sum(int(p.size) * p.dtype.itemsize for p in flat_params)
    io_bytes = 2 * (tile * data_dim * x.dtype.itemsize
                    + 3 * tile * n_pad * x.dtype.itemsize)
    vmem_limit = int(min(max(io_bytes + 2 * param_bytes + (4 << 20), 32 << 20),
                         48 << 20))

    kernel = _make_encoder_kernel(n_hidden, n_pad)

    mu_p, logvar_p, std_p = pl.pallas_call(
        kernel,
        out_shape=out_shape,
        grid=grid,
        in_specs=in_specs,
        out_specs=out_specs,
        compiler_params=pltpu.CompilerParams(
            dimension_semantics=("parallel",),      # megacore split on v7x
            vmem_limit_bytes=vmem_limit),
    )(x, *flat_params)

    # NOTE: padded rows of a partial last batch tile may hold garbage (and std's
    # padded lanes hold exp(0)=1); both are discarded here.  The prefix slices
    # below fuse into consumers under jit; padded lanes of mu/logvar are exact 0.
    mu = mu_p[:, :noise_dim]
    logvar = logvar_p[:, :noise_dim]
    std = std_p[:, :noise_dim]
    return mu, std, logvar


# ----------------------------------------------------------------------------
# Parameter init (deterministic, mimics nn.Linear uniform init) — f32 masters
# ----------------------------------------------------------------------------
def init_linear(key, d_in, d_out, dtype=jnp.float32):
    kw, kb = jax.random.split(key)
    bound = 1.0 / jnp.sqrt(d_in)
    w = jax.random.uniform(kw, (d_in, d_out), dtype, -bound, bound)
    b = jax.random.uniform(kb, (1, d_out), dtype, -bound, bound)
    return w, b


def make_encoder_params(key, data_dim, compress_dims, noise_dim):
    params = {"seq": []}
    dim = data_dim
    for item in compress_dims:
        key, sub = jax.random.split(key)
        params["seq"].append(init_linear(sub, dim, item))
        dim = item
    key, k1 = jax.random.split(key)
    key, k2 = jax.random.split(key)
    params["fc1"] = init_linear(k1, dim, noise_dim)
    params["fc2"] = init_linear(k2, dim, noise_dim)
    return params


# ----------------------------------------------------------------------------
# Pure-JAX f32 reference for sanity check
# ----------------------------------------------------------------------------
def encoder_ref(params, x):
    feature = x
    for w, b in params["seq"]:
        feature = jnp.maximum(feature @ w + b, 0.0)
    w1, b1 = params["fc1"]
    w2, b2 = params["fc2"]
    mu = feature @ w1 + b1
    logvar = feature @ w2 + b2
    return mu, jnp.exp(0.5 * logvar), logvar


if __name__ == "__main__":
    key = jax.random.PRNGKey(0)

    batch = 8
    data_dim = 32
    compress_dims = (64, 32)
    noise_dim = 16

    key, pkey, xkey = jax.random.split(key, 3)
    params = make_encoder_params(pkey, data_dim, compress_dims, noise_dim)
    enc = prepare_encoder(params, noise_dim)          # pad/merge/bf16 once
    x = jax.random.normal(xkey, (batch, data_dim), jnp.float32)

    mu, std, logvar = encoder_forward(enc, x)
    jax.block_until_ready((mu, std, logvar))

    mu_r, std_r, logvar_r = encoder_ref(params, x)
    assert mu.shape == (batch, noise_dim)
    assert std.shape == (batch, noise_dim)
    assert logvar.shape == (batch, noise_dim)
    # bf16 matmul operands (f32 accumulation) -> loosened tolerances vs f32 ref.
    assert jnp.allclose(mu, mu_r, atol=2e-2, rtol=2e-2), "mu mismatch"
    assert jnp.allclose(logvar, logvar_r, atol=2e-2, rtol=2e-2), "logvar mismatch"
    assert jnp.allclose(std, std_r, atol=2e-2, rtol=2e-2), "std mismatch"

    print("KERNEL_OK")
</pallas_src>

<mosaic_0001>
module attributes {stable_mosaic.version = 11 : i64} {
  func.func @kernel(%arg0: i32, %arg1: memref<8x32xf32, #tpu.memory_space<vmem>>, %arg2: memref<32x128xbf16, #tpu.memory_space<vmem>>, %arg3: memref<1x128xf32, #tpu.memory_space<vmem>>, %arg4: memref<128x128xbf16, #tpu.memory_space<vmem>>, %arg5: memref<1x128xf32, #tpu.memory_space<vmem>>, %arg6: memref<128x256xbf16, #tpu.memory_space<vmem>>, %arg7: memref<1x256xf32, #tpu.memory_space<vmem>>, %arg8: memref<8x128xf32, #tpu.memory_space<vmem>>, %arg9: memref<8x128xf32, #tpu.memory_space<vmem>>, %arg10: memref<8x128xf32, #tpu.memory_space<vmem>>) attributes {dimension_semantics = [#tpu.dimension_semantics<parallel>], iteration_bounds = array<i64: 1>, scalar_prefetch = 0 : i64, scratch_operands = 0 : i64, tpu.core_type = #tpu.core_type<tc>, window_params = [{transform_indices = @transform_0, window_bounds = array<i64: 8, 32>}, {pipeline_mode = #tpu.pipeline_mode<synchronous>, transform_indices = @transform_1, window_bounds = array<i64: 32, 128>}, {pipeline_mode = #tpu.pipeline_mode<synchronous>, transform_indices = @transform_2, window_bounds = array<i64: 1, 128>}, {pipeline_mode = #tpu.pipeline_mode<synchronous>, transform_indices = @transform_3, window_bounds = array<i64: 128, 128>}, {pipeline_mode = #tpu.pipeline_mode<synchronous>, transform_indices = @transform_4, window_bounds = array<i64: 1, 128>}, {pipeline_mode = #tpu.pipeline_mode<synchronous>, transform_indices = @transform_5, window_bounds = array<i64: 128, 256>}, {pipeline_mode = #tpu.pipeline_mode<synchronous>, transform_indices = @transform_6, window_bounds = array<i64: 1, 256>}, {transform_indices = @transform_7, window_bounds = array<i64: 8, 128>}, {transform_indices = @transform_8, window_bounds = array<i64: 8, 128>}, {transform_indices = @transform_9, window_bounds = array<i64: 8, 128>}]} {
    %c0 = arith.constant 0 : index
    %c0_0 = arith.constant 0 : index
    %0 = vector.load %arg1[%c0, %c0_0] : memref<8x32xf32, #tpu.memory_space<vmem>>, vector<8x32xf32>
    %c0_1 = arith.constant 0 : index
    %c0_2 = arith.constant 0 : index
    %1 = vector.load %arg2[%c0_1, %c0_2] : memref<32x128xbf16, #tpu.memory_space<vmem>>, vector<32x128xbf16>
    %c0_3 = arith.constant 0 : index
    %c0_4 = arith.constant 0 : index
    %2 = vector.load %arg3[%c0_3, %c0_4] : memref<1x128xf32, #tpu.memory_space<vmem>>, vector<1x128xf32>
    %3 = arith.truncf %0 : vector<8x32xf32> to vector<8x32xbf16>
    %cst = arith.constant dense<0.000000e+00> : vector<8x128xf32>
    %4 = tpu.matmul %3, %1, %cst {dimension_numbers = #tpu.dot_dimension_numbers<[1], [0], [0], [1], [0, 0, 1, 1], [], []>} : vector<8x32xbf16>, vector<32x128xbf16>, vector<8x128xf32> -> vector<8x128xf32>
    %5 = vector.broadcast %2 : vector<1x128xf32> to vector<8x128xf32>
    %6 = arith.addf %4, %5 : vector<8x128xf32>
    %cst_5 = arith.constant 0.000000e+00 : f32
    %7 = vector.broadcast %cst_5 : f32 to vector<8x128xf32>
    %8 = arith.maximumf %6, %7 : vector<8x128xf32>
    %c0_6 = arith.constant 0 : index
    %c0_7 = arith.constant 0 : index
    %9 = vector.load %arg4[%c0_6, %c0_7] : memref<128x128xbf16, #tpu.memory_space<vmem>>, vector<128x128xbf16>
    %c0_8 = arith.constant 0 : index
    %c0_9 = arith.constant 0 : index
    %10 = vector.load %arg5[%c0_8, %c0_9] : memref<1x128xf32, #tpu.memory_space<vmem>>, vector<1x128xf32>
    %11 = arith.truncf %8 : vector<8x128xf32> to vector<8x128xbf16>
    %cst_10 = arith.constant dense<0.000000e+00> : vector<8x128xf32>
    %12 = tpu.matmul %11, %9, %cst_10 {dimension_numbers = #tpu.dot_dimension_numbers<[1], [0], [0], [1], [0, 0, 1, 1], [], []>} : vector<8x128xbf16>, vector<128x128xbf16>, vector<8x128xf32> -> vector<8x128xf32>
    %13 = vector.broadcast %10 : vector<1x128xf32> to vector<8x128xf32>
    %14 = arith.addf %12, %13 : vector<8x128xf32>
    %cst_11 = arith.constant 0.000000e+00 : f32
    %15 = vector.broadcast %cst_11 : f32 to vector<8x128xf32>
    %16 = arith.maximumf %14, %15 : vector<8x128xf32>
    %c0_12 = arith.constant 0 : index
    %c0_13 = arith.constant 0 : index
    %17 = vector.load %arg6[%c0_12, %c0_13] : memref<128x256xbf16, #tpu.memory_space<vmem>>, vector<128x256xbf16>
    %c0_14 = arith.constant 0 : index
    %c0_15 = arith.constant 0 : index
    %18 = vector.load %arg7[%c0_14, %c0_15] : memref<1x256xf32, #tpu.memory_space<vmem>>, vector<1x256xf32>
    %19 = arith.truncf %16 : vector<8x128xf32> to vector<8x128xbf16>
    %cst_16 = arith.constant dense<0.000000e+00> : vector<8x256xf32>
    %20 = tpu.matmul %19, %17, %cst_16 {dimension_numbers = #tpu.dot_dimension_numbers<[1], [0], [0], [1], [0, 0, 1, 1], [], []>} : vector<8x128xbf16>, vector<128x256xbf16>, vector<8x256xf32> -> vector<8x256xf32>
    %21 = vector.broadcast %18 : vector<1x256xf32> to vector<8x256xf32>
    %22 = arith.addf %20, %21 : vector<8x256xf32>
    %23 = vector.extract_strided_slice %22 {offsets = [0, 0], sizes = [8, 128], strides = [1, 1]} : vector<8x256xf32> to vector<8x128xf32>
    %24 = vector.extract_strided_slice %22 {offsets = [0, 128], sizes = [8, 128], strides = [1, 1]} : vector<8x256xf32> to vector<8x128xf32>
    %cst_17 = arith.constant 5.000000e-01 : f32
    %25 = vector.broadcast %cst_17 : f32 to vector<8x128xf32>
    %26 = arith.mulf %25, %24 : vector<8x128xf32>
    %27 = math.exp %26 : vector<8x128xf32>
    %c0_18 = arith.constant 0 : index
    %c0_19 = arith.constant 0 : index
    %28 = vector.load %arg8[%c0_18, %c0_19] : memref<8x128xf32, #tpu.memory_space<vmem>>, vector<8x128xf32>
    tpu.vector_store %arg8[%c0_18, %c0_19], %23 {strides = array<i32>} : memref<8x128xf32, #tpu.memory_space<vmem>>, vector<8x128xf32>,
    %c0_20 = arith.constant 0 : index
    %c0_21 = arith.constant 0 : index
    %29 = vector.load %arg9[%c0_20, %c0_21] : memref<8x128xf32, #tpu.memory_space<vmem>>, vector<8x128xf32>
    tpu.vector_store %arg9[%c0_20, %c0_21], %24 {strides = array<i32>} : memref<8x128xf32, #tpu.memory_space<vmem>>, vector<8x128xf32>,
    %c0_22 = arith.constant 0 : index
    %c0_23 = arith.constant 0 : index
    %30 = vector.load %arg10[%c0_22, %c0_23] : memref<8x128xf32, #tpu.memory_space<vmem>>, vector<8x128xf32>
    tpu.vector_store %arg10[%c0_22, %c0_23], %27 {strides = array<i32>} : memref<8x128xf32, #tpu.memory_space<vmem>>, vector<8x128xf32>,
    return
  }
  func.func @transform_0(%arg0: i32) -> (i32, i32) {
    %c0_i32 = arith.constant 0 : i32
    %c0_i32_0 = arith.constant 0 : i32
    return %arg0, %c0_i32 : i32, i32
  }
  func.func @transform_1(%arg0: i32) -> (i32, i32) {
    %c0_i32 = arith.constant 0 : i32
    %c0_i32_0 = arith.constant 0 : i32
    %c0_i32_1 = arith.constant 0 : i32
    return %c0_i32, %c0_i32_0 : i32, i32
  }
  func.func @transform_2(%arg0: i32) -> (i32, i32) {
    %c0_i32 = arith.constant 0 : i32
    %c0_i32_0 = arith.constant 0 : i32
    %c0_i32_1 = arith.constant 0 : i32
    return %c0_i32, %c0_i32_0 : i32, i32
  }
  func.func @transform_3(%arg0: i32) -> (i32, i32) {
    %c0_i32 = arith.constant 0 : i32
    %c0_i32_0 = arith.constant 0 : i32
    %c0_i32_1 = arith.constant 0 : i32
    return %c0_i32, %c0_i32_0 : i32, i32
  }
  func.func @transform_4(%arg0: i32) -> (i32, i32) {
    %c0_i32 = arith.constant 0 : i32
    %c0_i32_0 = arith.constant 0 : i32
    %c0_i32_1 = arith.constant 0 : i32
    return %c0_i32, %c0_i32_0 : i32, i32
  }
  func.func @transform_5(%arg0: i32) -> (i32, i32) {
    %c0_i32 = arith.constant 0 : i32
    %c0_i32_0 = arith.constant 0 : i32
    %c0_i32_1 = arith.constant 0 : i32
    return %c0_i32, %c0_i32_0 : i32, i32
  }
  func.func @transform_6(%arg0: i32) -> (i32, i32) {
    %c0_i32 = arith.constant 0 : i32
    %c0_i32_0 = arith.constant 0 : i32
    %c0_i32_1 = arith.constant 0 : i32
    return %c0_i32, %c0_i32_0 : i32, i32
  }
  func.func @transform_7(%arg0: i32) -> (i32, i32) {
    %c0_i32 = arith.constant 0 : i32
    %c0_i32_0 = arith.constant 0 : i32
    return %arg0, %c0_i32 : i32, i32
  }
  func.func @transform_8(%arg0: i32) -> (i32, i32) {
    %c0_i32 = arith.constant 0 : i32
    %c0_i32_0 = arith.constant 0 : i32
    return %arg0, %c0_i32 : i32, i32
  }
  func.func @transform_9(%arg0: i32) -> (i32, i32) {
    %c0_i32 = arith.constant 0 : i32
    %c0_i32_0 = arith.constant 0 : i32
    return %arg0, %c0_i32 : i32, i32
  }
}

</mosaic_0001>

<bundles_post_ra>
// kernel: tpu_custom_call.1
= control target key start
LH: loop header
LB: loop body
LE: loop exit
PB: predicated region body
PF: predicated region fallthrough
CT: control target
= control target key end

     0   :  { %15 = vsyncpa [#allocation3], 0  ;;  %s855_s0 = inlined_call_operand.hbm [shape: f32[8,32], index: 0, kind: input, shape index: {}]   ;;  %s856_s1 = inlined_call_operand.hbm [shape: bf16[32,128], index: 1, kind: input, shape index: {}]   ;;  %s857_s2 = inlined_call_operand.vmem [shape: f32[1,128], index: 2, kind: input, shape index: {}]   ;;  %s858_s3 = inlined_call_operand.hbm [shape: bf16[128,128], index: 3, kind: input, shape index: {}]   ;;  %s859_s4 = inlined_call_operand.hbm [shape: f32[1,128], index: 4, kind: input, shape index: {}]   ;;  %s860_s5 = inlined_call_operand.hbm [shape: bf16[128,256], index: 5, kind: input, shape index: {}]   ;;  %s861_s6 = inlined_call_operand.vmem [shape: f32[1,256], index: 6, kind: input, shape index: {}]   ;;  %s862_s7 = inlined_call_operand.hbm [shape: f32[8,128], index: 7, kind: output, shape index: {0}]   ;;  %s863_s8 = inlined_call_operand.hbm [shape: f32[8,128], index: 8, kind: output, shape index: {1}]   ;;  %s864_s9 = inlined_call_operand.hbm [shape: f32[8,128], index: 9, kind: output, shape index: {2}]  }
   0x1   :  { %16 = vsyncpa [#allocation6], 0 }
   0x2   :  { %17 = vsyncpa [#allocation9], 0 }
   0x3   :  { %18 = vsyncpa [#allocation4], 0  ;;  %s35_s11 = sshll.u32 %s856_s1, 4  ;;  %s36_s11 = int_to_ptr.hbm [resolvable:$true] %s35_s11 }
   0x4   :  { %19 = vsyncpa [#allocation13], 0  ;;  %s763_s12 = smov [#allocation5]   ;;  %s64_s16 = sshll.u32 %s859_s4, 4  ;;  %s65_s16 = int_to_ptr.hbm [resolvable:$true] %s64_s16 }
   0x5   :  { %s37_s13 = sshll.u32 %s763_s12, 4  ;;  %s764_s17 = smov 64   ;;  %s38_s13 = int_to_ptr.vmem [resolvable:$true] %s37_s13 }
   0x6   :  { %s765_s18 = smov 4   ;;  %s766_s19 = smov [#allocation8]  }
   0x7   :  { %43 = dma.hbm_to_vmem [thread:$0]  %s36_s11, 256, %s38_s13, [#allocation6], %s764_s17, %s764_s17, %s765_s18  }
   0x8   :  { %s66_s20 = sshll.u32 %s766_s19, 4  ;;  %s25_s23 = sshll.u32 %s855_s0, 4  ;;  %s67_s20 = int_to_ptr.vmem [resolvable:$true] %s66_s20  ;;  %s26_s23 = int_to_ptr.hbm [resolvable:$true] %s25_s23 }
   0x9   :  { %69 = dma.hbm_to_vmem [thread:$0]  %s65_s16, 16, %s67_s20, [#allocation9]  }
   0xa   :  { %s50_s25 = sshll.u32 %s858_s3, 4  ;;  %s767_s26 = smov [#allocation2]   ;;  %s51_s25 = int_to_ptr.hbm [resolvable:$true] %s50_s25 }
   0xb   :  { %s27_s27 = sshll.u32 %s767_s26, 4  ;;  %s768_s4 = smov [#allocation7]   ;;  %s28_s27 = int_to_ptr.vmem [resolvable:$true] %s27_s27 }
   0xc   :  { %30 = dma.hbm_to_vmem [thread:$0]  %s26_s23, 128, %s28_s27, [#allocation3]  }
   0xd   :  { %s52_s28 = sshll.u32 %s768_s4, 4  ;;  %s74_s10 = sshll.u32 %s860_s5, 4  ;;  %s53_s28 = int_to_ptr.vmem [resolvable:$true] %s52_s28  ;;  %s75_s10 = int_to_ptr.hbm [resolvable:$true] %s74_s10 }
   0xe   :  { %58 = dma.hbm_to_vmem [thread:$0]  %s51_s25, 1024, %s53_s28, [#allocation6], %s764_s17, %s764_s17, %s765_s18  }
   0xf   :  { %s769_s0 = smov [#allocation10]   ;;  %s770_s12 = smov 128  }
  0x10   :  { %s76_s11 = sshll.u32 %s769_s0, 4  ;;  %s771_s13 = smov 8   ;;  %s77_s11 = int_to_ptr.vmem [resolvable:$true] %s76_s11 }
  0x11   :  { %82 = dma.hbm_to_vmem [thread:$0]  %s75_s10, 2048, %s77_s11, [#allocation9], %s770_s12, %s770_s12, %s771_s13  }
  0x12   :  { %753 = dma.done.wait [#allocation3], 128  }
  0x13   :  { %754 = vsyncadd [#allocation3], 4294967168 }
  0x14   :  { %755 = dma.done.wait [#allocation6], 1280  }
  0x15   :  { %756 = vsyncadd [#allocation6], 4294966016 }
  0x16   :  { %757 = dma.done.wait [#allocation9], 2064  }
  0x17   :  { %758 = vsyncadd [#allocation9], 4294965232  ;;  %v520_v0 = vld [vmem:[#allocation5 + $0x8] sm:$0xff]  ;;  %v519_v2 = vld [vmem:[#allocation5] sm:$0xff]  ;;  %vm128_vm0 = vcmask 261120   ;;  %s772_s15 = smov [#allocation11]  }
  0x18   :  { %v528_v1 = vld [vmem:[#allocation7 + $0x38] sm:$0xff]  ;;  %138 = vmatpush.bf16.msra.mxu0 %v520_v0  ;;  %v106_v3 = vld [vmem:[#allocation2] sm:$0xff]  ;;  %v527_v4 = vld [vmem:[#allocation7 + $0x30] sm:$0xff]  ;;  %s369_s16 = sshll.u32 %s772_s15, 4  ;;  %s371_s19 = sshll.u32 %s862_s7, 4  ;;  %s370_s16 = int_to_ptr.vmem [resolvable:$true] %s369_s16  ;;  %s372_s19 = int_to_ptr.hbm [resolvable:$true] %s371_s19 }
  0x19   :  { %215 = vmatpush.bf16.msra.mxu1 %v528_v1  ;;  %v112_v5 = vpack.c.bf16 %v106_v3, %v106_v3  ;;  %v526_v6 = vld [vmem:[#allocation7 + $0x28] sm:$0xff]  ;;  %v525_v7 = vld [vmem:[#allocation7 + $0x20] sm:$0xff]  ;;  %v524_v8 = vld [vmem:[#allocation7 + $0x18] sm:$0xff]  ;;  %s773_s20 = smov [#allocation12]   ;;  %s382_s1 = sshll.u32 %s863_s8, 4  ;;  %s383_s1 = int_to_ptr.hbm [resolvable:$true] %s382_s1 }
  0x1a   :  { %v523_v9 = vld [vmem:[#allocation7 + $0x10] sm:$0xff]  ;;  %v522_v10 = vld [vmem:[#allocation7 + $0x8] sm:$0xff]  ;;  %v521_v11 = vld [vmem:[#allocation7] sm:$0xff]  ;;  %s380_s21 = sshll.u32 %s773_s20, 4  ;;  %s393_s25 = sshll.u32 %s864_s9, 4  ;;  %s381_s21 = int_to_ptr.vmem [resolvable:$true] %s380_s21  ;;  %s394_s25 = int_to_ptr.hbm [resolvable:$true] %s393_s25 }
  0x1b   :  { %v513_v12 = vld [vmem:[#allocation10 + $0x70] sm:$0xf]  ;;  %v544_v13 = vld [vmem:[#allocation10 + $0x74] sm:$0xf0]  ;;  %v543_v14 = vld [vmem:[#allocation10 + $0x74] sm:$0xf] }
  0x1c   :  { %139 = vmatpush.bf16.msra.mxu0 %v519_v2  ;;  %v514_v15 = vor.u32 %v544_v13, %v513_v12  ;;  %v515_v16 = vld [vmem:[#allocation10 + $0x78] sm:$0xf0]  ;;  %v505_v17 = vld [vmem:[#allocation10 + $0x60] sm:$0xf]  ;;  %v542_v18 = vld [vmem:[#allocation10 + $0x64] sm:$0xf0] }
  0x1d   :  { %216 = vmatpush.bf16.msra.mxu1 %v527_v4  ;;  %v518_v19 = vor.u32 %v543_v14, %v515_v16  ;;  %v541_v20 = vld [vmem:[#allocation10 + $0x64] sm:$0xf]  ;;  %v507_v21 = vld [vmem:[#allocation10 + $0x68] sm:$0xf0]  ;;  %v506_v22 = vor.u32 %v542_v18, %v505_v17  ;;  %v497_v24 = vld [vmem:[#allocation10 + $0x50] sm:$0xf] }
  0x1e   :  { %332 = vmatpush.bf16.msra.mxu2 %v514_v15  ;;  %v510_v23 = vor.u32 %v541_v20, %v507_v21  ;;  %v540_v25 = vld [vmem:[#allocation10 + $0x54] sm:$0xf0]  ;;  %v539_v26 = vld [vmem:[#allocation10 + $0x54] sm:$0xf]  ;;  %v499_v27 = vld [vmem:[#allocation10 + $0x58] sm:$0xf0] }
  0x1f   :  { %422 = vmatmul.msk.bf16.vlgmr.msra.gmra.mxu0 %vm128_vm0, %v112_v5  ;;  %345 = vmatpush.bf16.msra.mxu3 %v518_v19  ;;  %v498_v28 = vor.u32 %v540_v25, %v497_v24  ;;  %v502_v29 = vor.u32 %v539_v26, %v499_v27  ;;  %v489_v30 = vld [vmem:[#allocation10 + $0x40] sm:$0xf]  ;;  %v538_v31 = vld [vmem:[#allocation10 + $0x44] sm:$0xf0]  ;;  %v537_v32 = vld [vmem:[#allocation10 + $0x44] sm:$0xf] }
  0x20   :  { %v491_v33 = vld [vmem:[#allocation10 + $0x48] sm:$0xf0]  ;;  %v490_v34 = vor.u32 %v538_v31, %v489_v30  ;;  %v481_v36 = vld [vmem:[#allocation10 + $0x30] sm:$0xf]  ;;  %v536_v37 = vld [vmem:[#allocation10 + $0x34] sm:$0xf0] }
  0x21   :  { %217 = vmatpush.bf16.msra.mxu1 %v526_v6  ;;  %v494_v35 = vor.u32 %v537_v32, %v491_v33  ;;  %v535_v38 = vld [vmem:[#allocation10 + $0x34] sm:$0xf]  ;;  %v483_v39 = vld [vmem:[#allocation10 + $0x38] sm:$0xf0]  ;;  %v482_v40 = vor.u32 %v536_v37, %v481_v36  ;;  %v473_v42 = vld [vmem:[#allocation10 + $0x20] sm:$0xf] }
  0x22   :  { %333 = vmatpush.bf16.msra.mxu2 %v506_v22  ;;  %v486_v41 = vor.u32 %v535_v38, %v483_v39  ;;  %v534_v43 = vld [vmem:[#allocation10 + $0x24] sm:$0xf0]  ;;  %v533_v44 = vld [vmem:[#allocation10 + $0x24] sm:$0xf]  ;;  %v475_v45 = vld [vmem:[#allocation10 + $0x28] sm:$0xf0] }
  0x23   :  { %346 = vmatpush.bf16.msra.mxu3 %v510_v23  ;;  %v474_v46 = vor.u32 %v534_v43, %v473_v42  ;;  %v478_v47 = vor.u32 %v533_v44, %v475_v45  ;;  %v557_v48 = vld [vmem:[%s857_s2] ss:$0 sm:$0xff]  ;;  %v465_v54 = vld [vmem:[#allocation10 + $0x10] sm:$0xf]  ;;  %v532_v55 = vld [vmem:[#allocation10 + $0x14] sm:$0xf0] }
  0x24   :  { %v531_v56 = vld [vmem:[#allocation10 + $0x14] sm:$0xf]  ;;  %v466_v57 = vor.u32 %v532_v55, %v465_v54  ;;  %v467_v58 = vld [vmem:[#allocation10 + $0x18] sm:$0xf0]  ;;  %v457_v60 = vld [vmem:[#allocation10] sm:$0xf] }
  0x25   :  { %218 = vmatpush.bf16.msra.mxu1 %v525_v7  ;;  %v470_v59 = vor.u32 %v531_v56, %v467_v58  ;;  %v530_v61 = vld [vmem:[#allocation10 + $0x4] sm:$0xf0]  ;;  %v529_v62 = vld [vmem:[#allocation10 + $0x4] sm:$0xf]  ;;  %v459_v0 = vld [vmem:[#allocation10 + $0x8] sm:$0xf0] }
  0x26   :  { %334 = vmatpush.bf16.msra.mxu2 %v498_v28  ;;  %v458_v63 = vor.u32 %v530_v61, %v457_v60  ;;  %v462_v1 = vor.u32 %v529_v62, %v459_v0  ;;  %v558_v2 = vld [vmem:[#allocation8] ss:$0 sm:$0xff] }
  0x27   :  { %347 = vmatpush.bf16.msra.mxu3 %v502_v29 }
  0x29   :  { %219 = vmatpush.bf16.msra.mxu1 %v524_v8  ;;  %v245_v8 = vld [vmem:[%s861_s6] sm:$0x3]  ;;  %s774_s6 = smov [#allocation14]  }
  0x2a   :  { %335 = vmatpush.bf16.msra.mxu2 %v490_v34  ;;  %s391_s7 = sshll.u32 %s774_s6, 4  ;;  %s392_s7 = int_to_ptr.vmem [resolvable:$true] %s391_s7 }
  0x2b   :  { %348 = vmatpush.bf16.msra.mxu3 %v494_v35 }
  0x2d   :  { %220 = vmatpush.bf16.msra.mxu1 %v523_v9  ;;  %v248_v9 = vperm.slane %v245_v8, 0 }
  0x2e   :  { %336 = vmatpush.bf16.msra.mxu2 %v482_v40 }
  0x2f   :  { %349 = vmatpush.bf16.msra.mxu3 %v486_v41 }
  0x31   :  { %221 = vmatpush.bf16.msra.mxu1 %v522_v10  ;;  %v249_v10 = vperm.slane %v245_v8, 1 }
  0x32   :  { %337 = vmatpush.bf16.msra.mxu2 %v474_v46 }
  0x33   :  { %350 = vmatpush.bf16.msra.mxu3 %v478_v47 }
  0x35   :  { %222 = vmatpush.bf16.msra.mxu1 %v521_v11 }
  0x36   :  { %338 = vmatpush.bf16.msra.mxu2 %v466_v57 }
  0x37   :  { %351 = vmatpush.bf16.msra.mxu3 %v470_v59 }
  0x3a   :  { %339 = vmatpush.bf16.msra.mxu2 %v458_v63 }
  0x3b   :  { %352 = vmatpush.bf16.msra.mxu3 %v462_v1 }
  0x9c   :  { %v141_v49 = vpop.f32.mrf.mxu0 }
  0x9d   :  { %v142_v50 = vadd.f32 %v557_v48, %v141_v49 }
  0x9f   :  { %v145_v51 = vmax.f32 %v142_v50, 0.0 }
  0xa1   :  { %v163_v52 = vpack.c.bf16 %v145_v51, %v145_v51 }
  0xa3   :  { %223 = vmatmul.bf16.vlgmr.msra.gmra.mxu1 %v163_v52 }
  0xa4   :  { %v143_v53 = vpop.f32.mrf.mxu0 }
 0x120   :  { %v224_v3 = vpop.f32.mrf.mxu1 }
 0x121   :  { %v225_v4 = vadd.f32 %v558_v2, %v224_v3 }
 0x123   :  { %v228_v5 = vmax.f32 %v225_v4, 0.0 }
 0x125   :  { %v246_v6 = vpack.c.bf16 %v228_v5, %v228_v5 }
 0x127   :  { %340 = vmatmul.bf16.vlgmr.msra.gmra.mxu2 %v246_v6  ;;  %353 = vmatmul.bf16.vlgmr.msra.gmra.mxu3 %v246_v6 }
 0x128   :  { %v226_v7 = vpop.f32.mrf.mxu1 }
 0x1aa   :  { %v341_v11 = vpop.f32.mrf.mxu2  ;;  %v354_v12 = vpop.f32.mrf.mxu3 }
 0x1ab   :  { %v342_v13 = vadd.f32 %v341_v11, %v248_v9  ;;  %v355_v14 = vadd.f32 %v354_v12, %v249_v10 }
 0x1ad   :  { %361 = vst [vmem:[#allocation11] sm:$0xff] %v342_v13  ;;  %v358_v15 = vmul.f32 0.5, %v355_v14 }
 0x1ae   :  { %362 = vst [vmem:[#allocation12] sm:$0xff] %v355_v14  ;;  %374 = dma.vmem_to_hbm [thread:$0]  %s370_s16, 128, %s372_s19, [#allocation4]  }
 0x1af   :  { %v359_v16 = vmul.f32 1.442695, %v358_v15  ;;  %385 = dma.vmem_to_hbm [thread:$0]  %s381_s21, 128, %s383_s1, [#allocation13]  }
 0x1b1   :  { %559 = vpow2.f32 %v359_v16 }
 0x1b2   :  { %v343_v17 = vpop.f32.mrf.mxu2  ;;  %v356_v18 = vpop.f32.mrf.mxu3 }
 0x1b7   :  { %v560_v19 = vpop.eup %559 }
 0x1b8   :  { %363 = vst [vmem:[#allocation14] sm:$0xff] %v560_v19 }
 0x1b9   :  { %396 = dma.vmem_to_hbm [thread:$0]  %s392_s7, 128, %s394_s25, [#allocation13]  }
 0x1ba   :  { %759 = dma.done.wait [#allocation4], 128  }
 0x1bb   :  { %760 = vsyncadd [#allocation4], 4294967168 }
 0x1bc   :  { %761 = dma.done.wait [#allocation13], 256  }
 0x1bd   :  { %762 = vsyncadd [#allocation13], 4294967040 }
 0x1be   :  { %409 = vsyncpa [#allocation3], 1 }
 0x1bf   :  { %410 = vsyncpa [#allocation6], 1 }
 0x1c0   :  { %411 = vsyncpa [#allocation9], 1 }
 0x1c1   :  { %412 = vsyncpa [#allocation4], 1 }
 0x1c2   :  { %413 = vsyncpa [#allocation13], 1 }

</bundles_post_ra>
